<compile_context>
chip_gen: v7x
topology: tpu7x:2x2x1
jax: 0.10.0
libtpu: 0.0.40
codegen_flags: <defaults>
</compile_context>

<pallas_src>
import jax
import jax.numpy as jnp
from jax.experimental import pallas as pl
from jax.experimental.pallas import tpu as pltpu

_LANES = 128
_MAX_BLOCK_ROWS = 1024   # (1024, 1024) f32 tile = 4 MiB per buffer
_MAX_BLOCK_COLS = 1024   # in + out, double-buffered -> <= 16 MiB resident (fits v7x)


def _copy_kernel(x_ref, o_ref):
    # Straight streaming copy: one load + one store per vreg, nothing else.
    o_ref[...] = x_ref[...]


def net_forward(x):
    """Pallas-free fast path: Net.forward(x) == x, so move zero bytes."""
    return x


def _lane_dense_2d(x):
    """Flatten x into a lane-dense (rows, cols) view with cols a multiple of 128."""
    total = x.size
    for cols in (_MAX_BLOCK_COLS, 512, 256, _LANES):
        if total % cols == 0:
            return x.reshape(total // cols, cols)
    return None


def net_forward_copy(x):
    """Materializing identity: tiled, lane-dense Pallas streaming copy."""
    x2d = _lane_dense_2d(x)
    if x2d is None:
        # TODO(synk): element count not a multiple of 128 -- fall back to the
        # zero-cost identity rather than padding inside the wrapper.
        return x

    rows, cols = x2d.shape
    # Full-extent block if small (exempt from the (8,128) rule); otherwise a
    # 1024-row tile (divisible by 8) with a cdiv grid for pipelined streaming.
    block_rows = rows if rows <= _MAX_BLOCK_ROWS else _MAX_BLOCK_ROWS
    grid = (pl.cdiv(rows, block_rows),)

    out2d = pl.pallas_call(
        _copy_kernel,
        out_shape=jax.ShapeDtypeStruct(x2d.shape, x2d.dtype),
        grid=grid,
        in_specs=[pl.BlockSpec((block_rows, cols), lambda i: (i, 0))],
        out_specs=pl.BlockSpec((block_rows, cols), lambda i: (i, 0)),
        # Reuse the input HBM buffer for the output; donate the input at the
        # jit boundary to make this a true in-place pass-through.
        input_output_aliases={0: 0},
        compiler_params=pltpu.CompilerParams(
            dimension_semantics=("parallel",),  # v7x: shard tiles across 2 TCs
        ),
    )(x2d)

    return out2d.reshape(x.shape)


if __name__ == "__main__":
    key = jax.random.PRNGKey(0)
    # Small NCHW input consistent with an image-style module.
    x = jax.random.normal(key, (2, 4, 16, 16), dtype=jnp.float32)

    # Recommended path: no kernel at all.
    y_fast = net_forward(x)

    # Materializing-copy path: run the Pallas kernel once.
    copy_fn = jax.jit(net_forward_copy)
    y = copy_fn(x)
    jax.block_until_ready(y)

    assert y.shape == x.shape
    assert y.dtype == x.dtype
    assert bool(jnp.allclose(y, x)), "identity copy kernel mismatch"
    assert bool(jnp.allclose(y_fast, x)), "identity fast path mismatch"

    print("KERNEL_OK")
</pallas_src>

<mosaic_0001>
module attributes {stable_mosaic.version = 11 : i64} {
  func.func @_copy_kernel(%arg0: i32, %arg1: memref<2x1024xf32, #tpu.memory_space<vmem>>, %arg2: memref<2x1024xf32, #tpu.memory_space<vmem>>) attributes {dimension_semantics = [#tpu.dimension_semantics<parallel>], iteration_bounds = array<i64: 1>, scalar_prefetch = 0 : i64, scratch_operands = 0 : i64, tpu.core_type = #tpu.core_type<tc>, window_params = [{transform_indices = @transform_0, window_bounds = array<i64: 2, 1024>}, {transform_indices = @transform_1, window_bounds = array<i64: 2, 1024>}]} {
    %c0 = arith.constant 0 : index
    %c0_0 = arith.constant 0 : index
    %0 = vector.load %arg1[%c0, %c0_0] : memref<2x1024xf32, #tpu.memory_space<vmem>>, vector<2x1024xf32>
    %c0_1 = arith.constant 0 : index
    %c0_2 = arith.constant 0 : index
    %1 = vector.load %arg2[%c0_1, %c0_2] : memref<2x1024xf32, #tpu.memory_space<vmem>>, vector<2x1024xf32>
    tpu.vector_store %arg2[%c0_1, %c0_2], %0 {strides = array<i32>} : memref<2x1024xf32, #tpu.memory_space<vmem>>, vector<2x1024xf32>,
    return
  }
  func.func @transform_0(%arg0: i32) -> (i32, i32) {
    %c0_i32 = arith.constant 0 : i32
    %c0_i32_0 = arith.constant 0 : i32
    return %arg0, %c0_i32 : i32, i32
  }
  func.func @transform_1(%arg0: i32) -> (i32, i32) {
    %c0_i32 = arith.constant 0 : i32
    %c0_i32_0 = arith.constant 0 : i32
    return %arg0, %c0_i32 : i32, i32
  }
}

</mosaic_0001>

<bundles_post_ra>
// kernel: net_forward_copy.1
= control target key start
LH: loop header
LB: loop body
LE: loop exit
PB: predicated region body
PF: predicated region fallthrough
CT: control target
= control target key end

     0   :  { %s38_s0 = inlined_call_operand.vmem [shape: f32[2,1024], index: 0, kind: input, shape index: {}, may-alias: {0,1}]   ;;  %s39_s1 = inlined_call_operand.vmem [shape: f32[2,1024], index: 1, kind: output, shape index: {}, may-alias: {0,1}]  }
   0x1   :  { %v8_v0 = vld [vmem:[%s38_s0] sm:$0xff]  ;;  %v9_v1 = vld [vmem:[%s38_s0 + $0x8] sm:$0xff] }
   0x2   :  { %10 = vst [vmem:[%s39_s1] sm:$0xff] %v8_v0  ;;  %11 = vst [vmem:[%s39_s1 + $0x8] sm:$0xff] %v9_v1 }

</bundles_post_ra>
